<compile_context>
chip_gen: v7x
topology: tpu7x:2x2x1
jax: 0.10.0
libtpu: 0.0.40
codegen_flags: <defaults>
</compile_context>

<pallas_src>
import numpy as np
import jax
import jax.numpy as jnp
from jax.experimental import pallas as pl
from jax.experimental.pallas import tpu as pltpu


# ---------------------------------------------------------------------------
# Deterministic weight construction (matches the PyTorch __init__ exactly)
# ---------------------------------------------------------------------------
def get_gaussian_kernel(k=3, mu=0, sigma=1, normalize=True):
    gaussian_1D = np.linspace(-1, 1, k)
    x, y = np.meshgrid(gaussian_1D, gaussian_1D)
    distance = (x ** 2 + y ** 2) ** 0.5
    gaussian_2D = np.exp(-(distance - mu) ** 2 / (2 * sigma ** 2))
    gaussian_2D = gaussian_2D / (2 * np.pi * sigma ** 2)
    if normalize:
        gaussian_2D = gaussian_2D / np.sum(gaussian_2D)
    return gaussian_2D


def get_sobel_kernel(k=3):
    rng = np.linspace(-(k // 2), k // 2, k)
    x, y = np.meshgrid(rng, rng)
    sobel_2D_numerator = x
    sobel_2D_denominator = x ** 2 + y ** 2
    sobel_2D_denominator[:, k // 2] = 1
    sobel_2D = sobel_2D_numerator / sobel_2D_denominator
    return sobel_2D


C_IN = 3   # module hard-codes 3 channels
K = 3      # kernel size

# Trace-time constants (identical to the PyTorch module's default __init__).
GAUSS_2D = get_gaussian_kernel(K, 0, 1)
_g1 = np.exp(-np.linspace(-1.0, 1.0, K) ** 2 / 2.0)
GAUSS_1D = _g1 / _g1.sum()                       # separable 1-D factor (mu=0)
assert np.allclose(np.outer(GAUSS_1D, GAUSS_1D), GAUSS_2D), \
    "gaussian kernel is not separable (mu != 0?)"
SOBEL_2D = get_sobel_kernel(K)                   # sobel_y = SOBEL_2D.T


# ---------------------------------------------------------------------------
# Border masks (grid-invariant; built once on host, DMA'd once)
# ---------------------------------------------------------------------------
# rows: 0=left_ok 1=right_ok 2=top_ok 3=bot_ok 4=TL 5=TR 6=BL 7=BR
_MASK_IDX = {(0, -1): 0, (0, 1): 1, (-1, 0): 2, (1, 0): 3,
             (-1, -1): 4, (-1, 1): 5, (1, -1): 6, (1, 1): 7}


def _border_masks(H, W, HW, HWp):
    lane = np.arange(HWp)
    row = lane // W
    col = lane % W
    valid = lane < HW
    left = valid & (col >= 1)
    right = valid & (col <= W - 2)
    top = valid & (row >= 1)
    bot = valid & (row <= H - 2)
    rows = [left, right, top, bot,
            top & left, top & right, bot & left, bot & right]
    return np.stack(rows).astype(np.float32)          # (8, HWp)


# ---------------------------------------------------------------------------
# Pallas kernel
# ---------------------------------------------------------------------------
def _make_kernel(H, W, HWp, C):
    g0, gc, g2 = (float(v) for v in GAUSS_1D)
    c_scale = float(C)      # folds the channel-mean of C identical channels

    def kernel(m_ref, x_ref, o_ref):
        # m_ref : (8, HWp)       f32 border masks (0/1), constant block
        # x_ref : (1, TB, C*HWp) f32 image block, channels folded onto lanes
        # o_ref : (1, TB, HWp)   f32 output block

        def mask(dy, dx):
            return m_ref[pl.ds(_MASK_IDX[(dy, dx)], 1), :]     # (1, HWp)

        def tap(a, dy, dx):
            # a[r+dy, c+dx] with zero SAME padding (wrap masked to 0).
            sh = dy * W + dx
            t = pltpu.roll(a, shift=(-sh) % HWp, axis=1)
            return t * mask(dy, dx)

        x = x_ref[0]                                   # (TB, C*HWp)
        s = x[:, 0:HWp]                                # channel sum -> (TB, HWp)
        for c in range(1, C):
            s = s + x[:, c * HWp:(c + 1) * HWp]

        # ---- gaussian blur: separable 3-tap column pass, then row pass ----
        v = gc * s + g0 * tap(s, -1, 0) + g2 * tap(s, 1, 0)
        blur = gc * v + g0 * tap(v, 0, -1) + g2 * tap(v, 0, 1)

        # ---- sobel x / y: sparse taps, fused roll->mask->FMA, shared ----
        gx = None
        gy = None
        for dy in (-1, 0, 1):
            for dx in (-1, 0, 1):
                wx = c_scale * float(SOBEL_2D[dy + 1, dx + 1])
                wy = c_scale * float(SOBEL_2D[dx + 1, dy + 1])   # transpose
                if wx == 0.0 and wy == 0.0:
                    continue                       # center + zero-weight taps
                t = tap(blur, dy, dx)
                if wx != 0.0:
                    gx = wx * t if gx is None else gx + wx * t
                if wy != 0.0:
                    gy = wy * t if gy is None else gy + wy * t

        o_ref[0] = jnp.sqrt(gx * gx + gy * gy).astype(o_ref.dtype)

    return kernel


def gradient_magnitude_filter(img):
    """img: (B, 3, H, W) float32.  Returns (B, 1, H, W) float32."""
    B, C, H, W = img.shape
    assert C == C_IN
    HW = H * W
    HWp = ((HW + 127) // 128) * 128          # lane-dense padding

    # Batch tiling: >= 2 grid steps whenever B >= 2 (v7x has 2 TensorCores).
    TB = min(8, max(1, -(-B // 2)))
    nb = pl.cdiv(B, TB)
    Bp = nb * TB

    x = img.astype(jnp.float32).reshape(B, C, HW)
    pad_b, pad_hw = Bp - B, HWp - HW
    if pad_b or pad_hw:
        x = jnp.pad(x, ((0, pad_b), (0, 0), (0, pad_hw)))
    # Channels folded onto the lane axis; batch split (nb, TB) so block
    # last-two-dims always equal the full array dims (legal for any TB).
    x = x.reshape(nb, TB, C * HWp)

    masks = jnp.asarray(_border_masks(H, W, HW, HWp))

    # Explicit scoped-VMEM budget (v5e default is only 16 MiB).
    tbp = ((TB + 7) // 8) * 8
    vmem_need = (2 * tbp * C * HWp + 2 * tbp * HWp + 8 * HWp) * 4 + (2 << 20)
    vmem_limit = int(max(vmem_need, 32 << 20))

    out = pl.pallas_call(
        _make_kernel(H, W, HWp, C),
        out_shape=jax.ShapeDtypeStruct((nb, TB, HWp), jnp.float32),
        grid_spec=pltpu.PrefetchScalarGridSpec(
            num_scalar_prefetch=0,
            grid=(nb,),
            in_specs=[
                pl.BlockSpec((8, HWp), lambda b: (0, 0)),           # masks
                pl.BlockSpec((1, TB, C * HWp), lambda b: (b, 0, 0)),  # image
            ],
            out_specs=pl.BlockSpec((1, TB, HWp), lambda b: (b, 0, 0)),
        ),
        compiler_params=pltpu.CompilerParams(
            dimension_semantics=("parallel",),
            vmem_limit_bytes=vmem_limit),
    )(masks, x)

    out = out.reshape(Bp, HWp)[:B, :HW]
    return out.reshape(B, 1, H, W)


# ---------------------------------------------------------------------------
# Pure-JAX reference (uses the full (3,3,3,3) repeated weights -> also
# validates the factorization + separable blur used inside the kernel)
# ---------------------------------------------------------------------------
def _repeat_weight(k2d):
    # torch: from_numpy(k2d).unsqueeze(0).unsqueeze(0).float().repeat(3,3,1,1)
    return np.tile(k2d.astype(np.float32)[None, None, :, :], (C_IN, C_IN, 1, 1))


def _ref_forward(img, g_w, sx_w, sy_w):
    dn = jax.lax.conv_dimension_numbers(img.shape, g_w.shape,
                                        ('NCHW', 'OIHW', 'NCHW'))

    def conv(x, w):
        return jax.lax.conv_general_dilated(x, w, (1, 1), 'SAME',
                                            dimension_numbers=dn)

    blurred = conv(img, g_w)
    grad_x = jnp.mean(conv(blurred, sx_w), axis=1, keepdims=True)
    grad_y = jnp.mean(conv(blurred, sy_w), axis=1, keepdims=True)
    return jnp.sqrt(grad_x ** 2 + grad_y ** 2)


if __name__ == "__main__":
    # full repeated weights, only for the reference check
    g_w = jnp.asarray(_repeat_weight(GAUSS_2D))
    sx_w = jnp.asarray(_repeat_weight(SOBEL_2D))
    sy_w = jnp.asarray(_repeat_weight(SOBEL_2D.T))

    # deterministic input: batch=2, channels=3 (module requires 3), 16x16
    key = jax.random.PRNGKey(0)
    img = jax.random.normal(key, (2, 3, 16, 16), dtype=jnp.float32)

    out = gradient_magnitude_filter(img)
    out = jax.block_until_ready(out)

    ref = _ref_forward(img, g_w, sx_w, sy_w)
    np.testing.assert_allclose(np.asarray(out), np.asarray(ref),
                               rtol=1e-4, atol=1e-4)

    print("KERNEL_OK")
</pallas_src>

<mosaic_0001>
module attributes {stable_mosaic.version = 11 : i64} {
  func.func @kernel(%arg0: i32, %arg1: memref<8x256xf32, #tpu.memory_space<vmem>>, %arg2: memref<1x1x768xf32, #tpu.memory_space<vmem>>, %arg3: memref<1x1x256xf32, #tpu.memory_space<vmem>>) attributes {dimension_semantics = [#tpu.dimension_semantics<parallel>], iteration_bounds = array<i64: 2>, scalar_prefetch = 0 : i64, scratch_operands = 0 : i64, tpu.core_type = #tpu.core_type<tc>, window_params = [{pipeline_mode = #tpu.pipeline_mode<synchronous>, transform_indices = @transform_0, window_bounds = array<i64: 8, 256>}, {transform_indices = @transform_1, window_bounds = array<i64: 1, 1, 768>}, {transform_indices = @transform_2, window_bounds = array<i64: 1, 1, 256>}]} {
    %c0 = arith.constant 0 : index
    %c0_0 = arith.constant 0 : index
    %c0_1 = arith.constant 0 : index
    %0 = vector.load %arg2[%c0, %c0_0, %c0_1] : memref<1x1x768xf32, #tpu.memory_space<vmem>>, vector<1x1x768xf32>
    %1 = vector.shape_cast %0 : vector<1x1x768xf32> to vector<1x768xf32>
    %2 = vector.extract_strided_slice %1 {offsets = [0, 0], sizes = [1, 256], strides = [1, 1]} : vector<1x768xf32> to vector<1x256xf32>
    %3 = vector.extract_strided_slice %1 {offsets = [0, 256], sizes = [1, 256], strides = [1, 1]} : vector<1x768xf32> to vector<1x256xf32>
    %4 = arith.addf %2, %3 : vector<1x256xf32>
    %5 = vector.extract_strided_slice %1 {offsets = [0, 512], sizes = [1, 256], strides = [1, 1]} : vector<1x768xf32> to vector<1x256xf32>
    %6 = arith.addf %4, %5 : vector<1x256xf32>
    %cst = arith.constant 0.451862752 : f32
    %7 = vector.broadcast %cst : f32 to vector<1x256xf32>
    %8 = arith.mulf %7, %6 : vector<1x256xf32>
    %c16_i32 = arith.constant 16 : i32
    %9 = tpu.dynamic_rotate %6 by %c16_i32 dim 1 : vector<1x256xf32>, i32 -> vector<1x256xf32>
    %c2 = arith.constant 2 : index
    %c0_2 = arith.constant 0 : index
    %10 = vector.load %arg1[%c2, %c0_2] : memref<8x256xf32, #tpu.memory_space<vmem>>, vector<1x256xf32>
    %11 = arith.mulf %9, %10 : vector<1x256xf32>
    %cst_3 = arith.constant 0.274068624 : f32
    %12 = vector.broadcast %cst_3 : f32 to vector<1x256xf32>
    %13 = arith.mulf %12, %11 : vector<1x256xf32>
    %14 = arith.addf %8, %13 : vector<1x256xf32>
    %c240_i32 = arith.constant 240 : i32
    %15 = tpu.dynamic_rotate %6 by %c240_i32 dim 1 : vector<1x256xf32>, i32 -> vector<1x256xf32>
    %c3 = arith.constant 3 : index
    %c0_4 = arith.constant 0 : index
    %16 = vector.load %arg1[%c3, %c0_4] : memref<8x256xf32, #tpu.memory_space<vmem>>, vector<1x256xf32>
    %17 = arith.mulf %15, %16 : vector<1x256xf32>
    %cst_5 = arith.constant 0.274068624 : f32
    %18 = vector.broadcast %cst_5 : f32 to vector<1x256xf32>
    %19 = arith.mulf %18, %17 : vector<1x256xf32>
    %20 = arith.addf %14, %19 : vector<1x256xf32>
    %cst_6 = arith.constant 0.451862752 : f32
    %21 = vector.broadcast %cst_6 : f32 to vector<1x256xf32>
    %22 = arith.mulf %21, %20 : vector<1x256xf32>
    %c1_i32 = arith.constant 1 : i32
    %23 = tpu.dynamic_rotate %20 by %c1_i32 dim 1 : vector<1x256xf32>, i32 -> vector<1x256xf32>
    %c0_7 = arith.constant 0 : index
    %c0_8 = arith.constant 0 : index
    %24 = vector.load %arg1[%c0_7, %c0_8] : memref<8x256xf32, #tpu.memory_space<vmem>>, vector<1x256xf32>
    %25 = arith.mulf %23, %24 : vector<1x256xf32>
    %cst_9 = arith.constant 0.274068624 : f32
    %26 = vector.broadcast %cst_9 : f32 to vector<1x256xf32>
    %27 = arith.mulf %26, %25 : vector<1x256xf32>
    %28 = arith.addf %22, %27 : vector<1x256xf32>
    %c255_i32 = arith.constant 255 : i32
    %29 = tpu.dynamic_rotate %20 by %c255_i32 dim 1 : vector<1x256xf32>, i32 -> vector<1x256xf32>
    %c1 = arith.constant 1 : index
    %c0_10 = arith.constant 0 : index
    %30 = vector.load %arg1[%c1, %c0_10] : memref<8x256xf32, #tpu.memory_space<vmem>>, vector<1x256xf32>
    %31 = arith.mulf %29, %30 : vector<1x256xf32>
    %cst_11 = arith.constant 0.274068624 : f32
    %32 = vector.broadcast %cst_11 : f32 to vector<1x256xf32>
    %33 = arith.mulf %32, %31 : vector<1x256xf32>
    %34 = arith.addf %28, %33 : vector<1x256xf32>
    %c17_i32 = arith.constant 17 : i32
    %35 = tpu.dynamic_rotate %34 by %c17_i32 dim 1 : vector<1x256xf32>, i32 -> vector<1x256xf32>
    %c4 = arith.constant 4 : index
    %c0_12 = arith.constant 0 : index
    %36 = vector.load %arg1[%c4, %c0_12] : memref<8x256xf32, #tpu.memory_space<vmem>>, vector<1x256xf32>
    %37 = arith.mulf %35, %36 : vector<1x256xf32>
    %cst_13 = arith.constant -1.500000e+00 : f32
    %38 = vector.broadcast %cst_13 : f32 to vector<1x256xf32>
    %39 = arith.mulf %38, %37 : vector<1x256xf32>
    %cst_14 = arith.constant -1.500000e+00 : f32
    %40 = vector.broadcast %cst_14 : f32 to vector<1x256xf32>
    %41 = arith.mulf %40, %37 : vector<1x256xf32>
    %c16_i32_15 = arith.constant 16 : i32
    %42 = tpu.dynamic_rotate %34 by %c16_i32_15 dim 1 : vector<1x256xf32>, i32 -> vector<1x256xf32>
    %c2_16 = arith.constant 2 : index
    %c0_17 = arith.constant 0 : index
    %43 = vector.load %arg1[%c2_16, %c0_17] : memref<8x256xf32, #tpu.memory_space<vmem>>, vector<1x256xf32>
    %44 = arith.mulf %42, %43 : vector<1x256xf32>
    %cst_18 = arith.constant -3.000000e+00 : f32
    %45 = vector.broadcast %cst_18 : f32 to vector<1x256xf32>
    %46 = arith.mulf %45, %44 : vector<1x256xf32>
    %47 = arith.addf %41, %46 : vector<1x256xf32>
    %c15_i32 = arith.constant 15 : i32
    %48 = tpu.dynamic_rotate %34 by %c15_i32 dim 1 : vector<1x256xf32>, i32 -> vector<1x256xf32>
    %c5 = arith.constant 5 : index
    %c0_19 = arith.constant 0 : index
    %49 = vector.load %arg1[%c5, %c0_19] : memref<8x256xf32, #tpu.memory_space<vmem>>, vector<1x256xf32>
    %50 = arith.mulf %48, %49 : vector<1x256xf32>
    %cst_20 = arith.constant 1.500000e+00 : f32
    %51 = vector.broadcast %cst_20 : f32 to vector<1x256xf32>
    %52 = arith.mulf %51, %50 : vector<1x256xf32>
    %53 = arith.addf %39, %52 : vector<1x256xf32>
    %cst_21 = arith.constant -1.500000e+00 : f32
    %54 = vector.broadcast %cst_21 : f32 to vector<1x256xf32>
    %55 = arith.mulf %54, %50 : vector<1x256xf32>
    %56 = arith.addf %47, %55 : vector<1x256xf32>
    %c1_i32_22 = arith.constant 1 : i32
    %57 = tpu.dynamic_rotate %34 by %c1_i32_22 dim 1 : vector<1x256xf32>, i32 -> vector<1x256xf32>
    %c0_23 = arith.constant 0 : index
    %c0_24 = arith.constant 0 : index
    %58 = vector.load %arg1[%c0_23, %c0_24] : memref<8x256xf32, #tpu.memory_space<vmem>>, vector<1x256xf32>
    %59 = arith.mulf %57, %58 : vector<1x256xf32>
    %cst_25 = arith.constant -3.000000e+00 : f32
    %60 = vector.broadcast %cst_25 : f32 to vector<1x256xf32>
    %61 = arith.mulf %60, %59 : vector<1x256xf32>
    %62 = arith.addf %53, %61 : vector<1x256xf32>
    %c255_i32_26 = arith.constant 255 : i32
    %63 = tpu.dynamic_rotate %34 by %c255_i32_26 dim 1 : vector<1x256xf32>, i32 -> vector<1x256xf32>
    %c1_27 = arith.constant 1 : index
    %c0_28 = arith.constant 0 : index
    %64 = vector.load %arg1[%c1_27, %c0_28] : memref<8x256xf32, #tpu.memory_space<vmem>>, vector<1x256xf32>
    %65 = arith.mulf %63, %64 : vector<1x256xf32>
    %cst_29 = arith.constant 3.000000e+00 : f32
    %66 = vector.broadcast %cst_29 : f32 to vector<1x256xf32>
    %67 = arith.mulf %66, %65 : vector<1x256xf32>
    %68 = arith.addf %62, %67 : vector<1x256xf32>
    %c241_i32 = arith.constant 241 : i32
    %69 = tpu.dynamic_rotate %34 by %c241_i32 dim 1 : vector<1x256xf32>, i32 -> vector<1x256xf32>
    %c6 = arith.constant 6 : index
    %c0_30 = arith.constant 0 : index
    %70 = vector.load %arg1[%c6, %c0_30] : memref<8x256xf32, #tpu.memory_space<vmem>>, vector<1x256xf32>
    %71 = arith.mulf %69, %70 : vector<1x256xf32>
    %cst_31 = arith.constant -1.500000e+00 : f32
    %72 = vector.broadcast %cst_31 : f32 to vector<1x256xf32>
    %73 = arith.mulf %72, %71 : vector<1x256xf32>
    %74 = arith.addf %68, %73 : vector<1x256xf32>
    %cst_32 = arith.constant 1.500000e+00 : f32
    %75 = vector.broadcast %cst_32 : f32 to vector<1x256xf32>
    %76 = arith.mulf %75, %71 : vector<1x256xf32>
    %77 = arith.addf %56, %76 : vector<1x256xf32>
    %c240_i32_33 = arith.constant 240 : i32
    %78 = tpu.dynamic_rotate %34 by %c240_i32_33 dim 1 : vector<1x256xf32>, i32 -> vector<1x256xf32>
    %c3_34 = arith.constant 3 : index
    %c0_35 = arith.constant 0 : index
    %79 = vector.load %arg1[%c3_34, %c0_35] : memref<8x256xf32, #tpu.memory_space<vmem>>, vector<1x256xf32>
    %80 = arith.mulf %78, %79 : vector<1x256xf32>
    %cst_36 = arith.constant 3.000000e+00 : f32
    %81 = vector.broadcast %cst_36 : f32 to vector<1x256xf32>
    %82 = arith.mulf %81, %80 : vector<1x256xf32>
    %83 = arith.addf %77, %82 : vector<1x256xf32>
    %c239_i32 = arith.constant 239 : i32
    %84 = tpu.dynamic_rotate %34 by %c239_i32 dim 1 : vector<1x256xf32>, i32 -> vector<1x256xf32>
    %c7 = arith.constant 7 : index
    %c0_37 = arith.constant 0 : index
    %85 = vector.load %arg1[%c7, %c0_37] : memref<8x256xf32, #tpu.memory_space<vmem>>, vector<1x256xf32>
    %86 = arith.mulf %84, %85 : vector<1x256xf32>
    %cst_38 = arith.constant 1.500000e+00 : f32
    %87 = vector.broadcast %cst_38 : f32 to vector<1x256xf32>
    %88 = arith.mulf %87, %86 : vector<1x256xf32>
    %89 = arith.addf %74, %88 : vector<1x256xf32>
    %cst_39 = arith.constant 1.500000e+00 : f32
    %90 = vector.broadcast %cst_39 : f32 to vector<1x256xf32>
    %91 = arith.mulf %90, %86 : vector<1x256xf32>
    %92 = arith.addf %83, %91 : vector<1x256xf32>
    %93 = arith.mulf %89, %89 : vector<1x256xf32>
    %94 = arith.mulf %92, %92 : vector<1x256xf32>
    %95 = arith.addf %93, %94 : vector<1x256xf32>
    %96 = math.sqrt %95 : vector<1x256xf32>
    %c0_40 = arith.constant 0 : index
    %c0_41 = arith.constant 0 : index
    %c0_42 = arith.constant 0 : index
    %97 = vector.load %arg3[%c0_40, %c0_41, %c0_42] : memref<1x1x256xf32, #tpu.memory_space<vmem>>, vector<1x1x256xf32>
    %98 = vector.shape_cast %97 : vector<1x1x256xf32> to vector<1x256xf32>
    %99 = vector.shape_cast %96 : vector<1x256xf32> to vector<1x1x256xf32>
    tpu.vector_store %arg3[%c0_40, %c0_41, %c0_42], %99 {strides = array<i32>} : memref<1x1x256xf32, #tpu.memory_space<vmem>>, vector<1x1x256xf32>,
    return
  }
  func.func @transform_0(%arg0: i32) -> (i32, i32) {
    %c0_i32 = arith.constant 0 : i32
    %c0_i32_0 = arith.constant 0 : i32
    %c0_i32_1 = arith.constant 0 : i32
    return %c0_i32, %c0_i32_0 : i32, i32
  }
  func.func @transform_1(%arg0: i32) -> (i32, i32, i32) {
    %c0_i32 = arith.constant 0 : i32
    %c0_i32_0 = arith.constant 0 : i32
    %c0_i32_1 = arith.constant 0 : i32
    return %arg0, %c0_i32, %c0_i32_0 : i32, i32, i32
  }
  func.func @transform_2(%arg0: i32) -> (i32, i32, i32) {
    %c0_i32 = arith.constant 0 : i32
    %c0_i32_0 = arith.constant 0 : i32
    %c0_i32_1 = arith.constant 0 : i32
    return %arg0, %c0_i32, %c0_i32_0 : i32, i32, i32
  }
}

</mosaic_0001>

<bundles_post_ra>
// kernel: tpu_custom_call.1
= control target key start
LH: loop header
LB: loop body
LE: loop exit
PB: predicated region body
PF: predicated region fallthrough
CT: control target
= control target key end

     0   :  { %7 = vsyncpa [#allocation3], 0  ;;  %s1274_s0 = inlined_call_operand.hbm [shape: f32[8,256], index: 0, kind: input, shape index: {}]   ;;  %s1275_s1 = inlined_call_operand.hbm [shape: f32[2,1,768], index: 1, kind: input, shape index: {}]   ;;  %s1276_s2 = inlined_call_operand.hbm [shape: f32[2,1,256], index: 2, kind: output, shape index: {}]  }
   0x1   :  { %8 = vsyncpa [#allocation6], 0 }
   0x2   :  { %10 = vsyncpa [#allocation6 + $0x1], 0 }
   0x3   :  { %11 = vsyncpa [#allocation4], 0 }
   0x4   :  { %13 = vsyncpa [#allocation4 + $0x1], 0  ;;  %s933_s9 = smov 0   ;;  %s935_s10 = smov 0  }
   0x5   :  { %s937_s11 = smov 0   ;;  %s939_s12 = smov 0  }
   0x6 LB: > { %s954_s13 = sadd.s32 4294967295, %s904_s12   ;;  %s689_s14 = sadd.s32 4294967294, %s904_s12   ;;  %s904_s12 = sphi %s939_s12, %s1300_s12   ;;  %s900_s11 = sphi %s937_s11, %s1299_s11   ;;  %s896_s10 = sphi %s935_s10, %s1298_s10   ;;  %s892_s9 = sphi %s933_s9, %s1297_s9  }
   0x7   : > { %p60_p0 = scmp.ne.s32.totalorder %s896_s10, %s892_s9  ;;  %p1277_p1 = scmp.eq.s32.totalorder %s954_s13, 0 }
   0x8   : > { %p90_p3 = scmp.eq.s32.totalorder %s689_s14, 1  ;;  %p690_p5 = scmp.ge.s32.totalorder %s904_s12, 1 }
   0x9   : > { %p963_p4 = por %p1277_p1, %p60_p0  ;;  %p97_p7 = scmp.lt.s32.totalorder %s904_s12, 3 }
   0xa   : > { %p968_p6 = por %p90_p3, %p60_p0  ;;  %s906_s18 = smov [#allocation2]  }
   0xb   : > { %s1280_s15 = scalar_select %p963_p4, 1, 0 }
   0xc   : > { %s1281_s16 = scalar_select %p968_p6, 1, 0 }
   0xd   : > { %p973_p8 = pnand %p690_p5, %p97_p7  ;;  %s110_s19 = sshll.u32 %s906_s18, 4  ;;  %s111_s19 = int_to_ptr.vmem [resolvable:$true] %s110_s19 }
   0xe   : > { %s981_s20 = sadd.s32 1, %s904_s12   ;;  %s47_s24 = sadd.s32 1, %s900_s11 }
   0xf   : > { %s1282_s17 = scalar_select %p973_p8, 1, 0 }
  0x10   : > { %p714_p10 = pneg %p973_p8  ;;  %s44_s22 = ssub.s32 %s904_s12, %s981_s20 }
  0x11   : > { %p991_p12 = scmp.eq.s32.totalorder %s44_s22, 0  ;;  %s776_s27 = scalar_lea.hbm %s1274_s0, 256 }
  0x12   : > { %p985_p11 = pnand %p714_p10, %p1277_p1  ;;  %p777_p0 = scmp.ne.s32.totalorder %s1274_s0, %s776_s27 }
  0x13   : > { %s1284_s23 = scalar_select %p991_p12, 1, 0 }
  0x14   : > { %p778_p3 = pneg %p985_p11  ;;  %p783_p10 = scmp.lt.u32.totalorder %s776_s27, %s1274_s0 }
  0x16   : > { %p779_p5 = pnand %p778_p3, %p777_p0 }
  0x18   : > { %p780_p7 = pneg %p779_p5 }
  0x1a   : > { %p785_p9 = pnand %p783_p10, %p780_p7 }
  0x1c   : > { %788 = shalt.err (!%p785_p9)
}
  0x1d   : > { %s789_s4 = scalar_lea.vmem %s111_s19, 256  ;;  %p797_p6 = scmp.lt.s32.totalorder %s111_s19, %s111_s19 }
  0x1e   : > { %p790_p1 = scmp.ne.s32.totalorder %s111_s19, %s789_s4  ;;  %p798_p4 = scmp.lt.s32.totalorder %s789_s4, %s789_s4 }
  0x20   : > { %p792_p2 = pnand %p790_p1, %p778_p3  ;;  %p799_p8 = por %p798_p4, %p797_p6 }
  0x22   : > { %p793_p13 = pneg %p792_p2 }
  0x24   : > { %p800_p12 = pnand %p799_p8, %p793_p13 }
  0x26   : > { %803 = shalt.err (!%p800_p12)
}
  0x27   : > { %717 = dma.hbm_to_vmem [thread:$0]  (!%p985_p11), %s1274_s0, 256, %s111_s19, [#allocation3]  }
  0x28   : > { %p1285_p1 = scmp.ne.s32.totalorder %s1284_s23, 0  ;;  %p55_p2 = scmp.eq.s32.totalorder %s904_s12, 0 }
  0x29   : > { %p1286_p4 = scmp.ne.s32.totalorder %s900_s11, %s896_s10  ;;  %p1287_p6 = scmp.eq.s32.totalorder %s954_s13, 1 }
  0x2a   : > { %s1017_s7 = scalar_select %p1285_p1, %s900_s11, %s47_s24  }
  0x2b   : > { %p1025_p8 = por %p1287_p6, %p1286_p4  ;;  %p727_p9 = scmp.lt.s32.totalorder %s904_s12, 2 }
  0x2c   : > { %s121_s14 = sand.u32 1, %s900_s11   ;;  %p1289_p12 = pmov %p1286_p4 }
  0x2d   : > { %s703_s18 = smul.u32 6, %s121_s14  ;;  %s122_s27 = scalar_lea.sflag [#allocation6], %s121_s14 }
  0x2e   : > { %p56_p13 = por %p55_p2, %p1289_p12  ;;  %s704_s21 = smul.u32 96, %s904_s12 }
  0x2f   : > { %s125_s25 = scalar_lea.vmem [#allocation5], %s703_s18  ;;  %s809_s3 = scalar_lea.hbm %s1275_s1, 192 }
  0x30   : > { %p1035_p0 = pnand %p727_p9, %p56_p13  ;;  %s1042_s24 = scalar_lea.hbm %s1275_s1, %s704_s21 }
  0x31   : > { %s133_s26 = sshll.u32 %s125_s25, 4  ;;  %s804_s28 = scalar_lea.hbm %s1042_s24, 96  ;;  %s1044_s26 = int_to_ptr.vmem [resolvable:$true] %s133_s26 }
  0x32   : > { %p805_p11 = scmp.ne.s32.totalorder %s1042_s24, %s804_s28  ;;  %p806_p3 = pneg %p1035_p0 }
  0x33   : > { %p810_p10 = scmp.lt.u32.totalorder %s1042_s24, %s1275_s1  ;;  %p811_p1 = scmp.lt.u32.totalorder %s809_s3, %s804_s28 }
  0x34   : > { %p807_p5 = pnand %p806_p3, %p805_p11  ;;  %p813_p4 = scmp.lt.u32.totalorder %s804_s28, %s1042_s24 }
  0x35   : > { %p812_p2 = por %p811_p1, %p810_p10 }
  0x36   : > { %p808_p7 = pneg %p807_p5 }
  0x37   : > { %p814_p6 = por %p813_p4, %p812_p2 }
  0x39   : > { %p815_p9 = pnand %p814_p6, %p808_p7 }
  0x3b   : > { %818 = shalt.err (!%p815_p9)
}
  0x3c   : > { %s819_s6 = scalar_lea.vmem %s1044_s26, 96  ;;  %s907_s14 = smov [#allocation5]  }
  0x3d   : > { %p820_p12 = scmp.ne.s32.totalorder %s1044_s26, %s819_s6  ;;  %s824_s18 = sshll.u32 %s907_s14, 4  ;;  %s825_s18 = int_to_ptr.vmem [resolvable:$false] %s824_s18 }
  0x3e   : > { %s826_s21 = scalar_lea.vmem %s825_s18, 192  ;;  %p827_p5 = scmp.lt.s32.totalorder %s1044_s26, %s825_s18 }
  0x3f   : > { %p822_p13 = pnand %p820_p12, %p806_p3  ;;  %p828_p10 = scmp.lt.s32.totalorder %s826_s21, %s819_s6 }
  0x41   : > { %p823_p11 = pneg %p822_p13  ;;  %p829_p1 = por %p828_p10, %p827_p5 }
  0x43   : > { %p830_p2 = pnand %p829_p1, %p823_p11 }
  0x45   : > { %833 = shalt.err (!%p830_p2)
}
  0x46   : > { %721 = dma.hbm_to_vmem [thread:$0]  (!%p1035_p0), %s1042_s24, 96, %s1044_s26, %s122_s27  }
  0x47   : > { %p1291_p7 = scmp.ne.s32.totalorder %s1282_s17, 0 }
  0x48   : > { %p1292_p3 = scmp.eq.s32.totalorder (!%p1291_p7), %s954_s13, 0 }
  0x49   : > { %142 = sbr.rel (%p1291_p7) target bundleno = 556 (0x22c), region = 28 }
  0x50   : > { %879 = dma.done.wait (%p1292_p3), [#allocation3], 256   ;;  %p1293_p4 = pmov %p1292_p3 }
  0x51   : > { %s1078_s19 = sand.u32 1, %s896_s10   ;;  %p1294_p6 = scmp.ne.s32.totalorder %s1280_s15, 0 }
  0x52   : > { %881 = vsyncadd (%p1293_p4), [#allocation3], 4294967040  ;;  %s705_s23 = smul.u32 6, %s1078_s19  ;;  %s149_s22 = scalar_lea.sflag [#allocation6], %s1078_s19 }
  0x54   : > { %s152_s25 = scalar_lea.vmem [#allocation5], %s705_s23 }
  0x55   : > { %883 = dma.done.wait (%p1294_p6), %s149_s22, 96  }
  0x56   : > { %885 = vsyncadd (%p1294_p6), %s149_s22, 4294967200  ;;  %v183_v0 = vlaneseq  ;;  %v173_v2 = vld [vmem:[%s152_s25] sm:$0x3f]  ;;  %s908_s17 = smov 112   ;;  %s909_s24 = smov 16  }
  0x57   : > { %v175_v3 = vrot.slane %v173_v2, 2  ;;  %v178_v4 = vrot.slane %v173_v2, 4  ;;  %v246_v12 = vld [vmem:[#allocation2 + $0x3] ss:$8 sm:$0x3]  ;;  %s911_s15 = smov 1  }
  0x58   : > { %v184_v1 = vshrl.u32 %v183_v0, 7  ;;  %v1098_v11 = vand.u32 127, %v183_v0  ;;  %v203_v13 = vld [vmem:[#allocation2 + $0x2] ss:$8 sm:$0x3]  ;;  %s912_s26 = smov 127  }
  0x59   : > { %v177_v5 = vadd.f32 %v175_v3, %v173_v2  ;;  %v910_v16 = vmov 1966171168   ;;  %v300_v49 = vld [vmem:[#allocation2] ss:$8 sm:$0x3]  ;;  %s913_s27 = smov 17  }
  0x5a   : > { %v1087_v6 = vsub.s32 0, %v184_v1  ;;  %v1089_v8 = vsub.s32 1, %v184_v1  ;;  %v223_v17 = vunpack.c.l.s4 %v910_v16  ;;  %vm242_vm0 = vcmp.lt.s32.totalorder %v1098_v11, 112  ;;  %v343_v52 = vld [vmem:[#allocation2 + $0x1] ss:$8 sm:$0x3] }
  0x5b   : > { %v180_v7 = vadd.f32 %v178_v4, %v177_v5  ;;  %vm199_vm1 = vcmp.lt.s32.totalorder %v1098_v11, 16  ;;  %vm297_vm2 = vcmp.lt.s32.totalorder %v1098_v11, 1  ;;  %vm339_vm3 = vcmp.lt.s32.totalorder %v1098_v11, 127  ;;  %s914_s28 = smov 15   ;;  %s915_s29 = smov 113  }
  0x5c   : > { %v1103_v18 = vrot.slane %v246_v12, %v1087_v6  ;;  %v1106_v19 = vrot.slane %v246_v12, %v1089_v8  ;;  %v1109_v20 = vrot.slane %v203_v13, %v1087_v6  ;;  %v1112_v21 = vrot.slane %v203_v13, %v1089_v8  ;;  %s916_s30 = smov 111   ;;  %s696_s3 = sshll.u32 %s1078_s19, 1 }
  0x5d   : > { %v186_v9 = vrot.slane %v180_v7, %v1087_v6  ;;  %v190_v10 = vrot.slane %v180_v7, %v1089_v8  ;;  %v224_v22 = vunpack.c.0.s8 %v223_v17  ;;  %v181_v40 = vmul.f32 0.45186275, %v180_v7  ;;  %s702_s4 = sshll.u32 %s954_s13, 5  ;;  %s172_s5 = scalar_lea.vmem [#allocation7], %s696_s3 }
  0x5e   : > { %v1140_v50 = vrot.slane %v300_v49, %v1087_v6  ;;  %v1143_v51 = vrot.slane %v300_v49, %v1089_v8  ;;  %v1153_v59 = vrot.slane %v343_v52, %v1087_v6  ;;  %v1156_v60 = vrot.slane %v343_v52, %v1089_v8  ;;  %s607_s6 = sshll.u32 %s172_s5, 4  ;;  %s1230_s21 = scalar_lea.hbm %s1276_s2, %s702_s4  ;;  %s1232_s6 = int_to_ptr.vmem [resolvable:$true] %s607_s6 }
  0x5f   : > { %238 = vrot.lane.b32.xlu1 %v186_v9, %s908_s17  ;;  %193 = vrot.lane.b32.xlu0 %v186_v9, %s909_s24  ;;  %v1126_v36 = vsub.s32 %v224_v22, %v184_v1  ;;  %vm393_vm4 = vcmp.lt.s32.totalorder %v1098_v11, 17  ;;  %vm429_vm5 = vcmp.lt.s32.totalorder %v1098_v11, 15  ;;  %vm483_vm6 = vcmp.lt.s32.totalorder %v1098_v11, 113  ;;  %s593_s13 = scalar_lea.sflag [#allocation4], %s1078_s19  ;;  %s834_s23 = scalar_lea.vmem %s1232_s6, 32 }
  0x60   : > { %vm525_vm7 = vcmp.lt.s32.totalorder %v1098_v11, 111  ;;  %vm589_vm12 = vcmp.lt.s32.totalorder %v183_v0, 256  ;;  %p835_p0 = scmp.ne.s32.totalorder %s1232_s6, %s834_s23  ;;  %s917_s22 = smov [#allocation7]  }
  0x61   : > { %s838_s25 = sshll.u32 %s917_s22, 4  ;;  %s839_s25 = int_to_ptr.vmem [resolvable:$false] %s838_s25 }
  0x62   : > { %p836_p9 = pnand %p835_p0, %p1025_p8  ;;  %p841_p13 = scmp.lt.s32.totalorder %s1232_s6, %s839_s25 }
  0x63   : > { %240 = vrot.lane.b32.xlu1 %v190_v10, %s908_s17  ;;  %195 = vrot.lane.b32.xlu0 %v190_v10, %s909_s24 }
  0x64   : > { %p837_p12 = pneg %p836_p9 }
  0xd1   : > { %v239_v14 = vpop.permute.xlu1 %238  ;;  %v194_v15 = vpop.permute.xlu0 %193 }
  0xd5   : > { %v241_v23 = vpop.permute.xlu1 %240  ;;  %v196_v24 = vpop.permute.xlu0 %195 }
  0xd6   : > { %v243_v25 = vsel %vm242_vm0, %v239_v14, %v241_v23  ;;  %v244_v26 = vsel %vm242_vm0, %v241_v23, %v239_v14  ;;  %v200_v27 = vsel %vm199_vm1, %v194_v15, %v196_v24  ;;  %v201_v28 = vsel %vm199_vm1, %v196_v24, %v194_v15 }
  0xd7   : > { %v258_v29 = vmul.f32 %v1103_v18, %v243_v25  ;;  %v259_v30 = vmul.f32 %v1106_v19, %v244_v26  ;;  %v215_v31 = vmul.f32 %v1109_v20, %v201_v28  ;;  %v216_v32 = vmul.f32 %v1112_v21, %v200_v27 }
  0xd9   : > { %v260_v33 = vmul.f32 0.27406862, %v258_v29  ;;  %v261_v34 = vmul.f32 0.27406862, %v259_v30  ;;  %v217_v35 = vmul.f32 0.27406862, %v215_v31 }
  0xda   : > { %v218_v37 = vmul.f32 0.27406862, %v216_v32  ;;  %v397_v30 = vld [vmem:[#allocation2 + $0x4] ss:$8 sm:$0x3] }
  0xdb   : > { %v264_v38 = vcombine.low %v260_v33, %v261_v34  ;;  %v433_v33 = vld [vmem:[#allocation2 + $0x5] ss:$8 sm:$0x3]  ;;  %v402_v34 = vrot.slane %v397_v30, %v1087_v6 }
  0xdc   : > { %v221_v39 = vcombine.low %v217_v35, %v218_v37  ;;  %v406_v35 = vrot.slane %v397_v30, %v1089_v8 }
  0xdd   : > { %v271_v41 = vrot.slane %v264_v38, %v1126_v36 }
  0xde   : > { %v228_v42 = vrot.slane %v221_v39, %v1126_v36  ;;  %v438_v39 = vrot.slane %v433_v33, %v1087_v6 }
  0xdf   : > { %v278_v44 = vrot.slane %v271_v41, %v1126_v36 }
  0xe0   : > { %v235_v43 = vrot.slane %v228_v42, %v1126_v36 }
  0xe2   : > { %v237_v45 = vadd.f32 %v235_v43, %v181_v40  ;;  %v442_v40 = vrot.slane %v433_v33, %v1089_v8 }
  0xe4   : > { %v280_v46 = vadd.f32 %v278_v44, %v237_v45 }
  0xe6   : > { %v290_v47 = vrot.slane %v280_v46, %v1089_v8  ;;  %v286_v48 = vrot.slane %v280_v46, %v1087_v6  ;;  %v281_v15 = vmul.f32 0.45186275, %v280_v46 }
  0xe8   : > { %295 = vrot.lane.b32.xlu1 %v290_v47, %s911_s15  ;;  %293 = vrot.lane.b32.xlu0 %v286_v48, %s911_s15 }
  0xec   : > { %337 = vrot.lane.b32.xlu1 %v290_v47, %s912_s26  ;;  %335 = vrot.lane.b32.xlu0 %v286_v48, %s912_s26 }
 0x15a   : > { %v296_v53 = vpop.permute.xlu1 %295  ;;  %v294_v54 = vpop.permute.xlu0 %293 }
 0x15b   : > { %v298_v55 = vsel %vm297_vm2, %v294_v54, %v296_v53  ;;  %v299_v56 = vsel %vm297_vm2, %v296_v53, %v294_v54  ;;  %v487_v53 = vld [vmem:[#allocation2 + $0x6] ss:$8 sm:$0x3] }
 0x15c   : > { %v312_v57 = vmul.f32 %v1140_v50, %v299_v56  ;;  %v313_v58 = vmul.f32 %v1143_v51, %v298_v55 }
 0x15e   : > { %v314_v61 = vmul.f32 0.27406862, %v312_v57  ;;  %v315_v62 = vmul.f32 0.27406862, %v313_v58  ;;  %v338_v63 = vpop.permute.xlu1 %337  ;;  %v336_v1 = vpop.permute.xlu0 %335 }
 0x15f   : > { %v340_v2 = vsel %vm339_vm3, %v336_v1, %v338_v63  ;;  %v341_v3 = vsel %vm339_vm3, %v338_v63, %v336_v1 }
 0x160   : > { %v318_v4 = vcombine.low %v314_v61, %v315_v62  ;;  %v355_v5 = vmul.f32 %v1153_v59, %v340_v2  ;;  %v356_v7 = vmul.f32 %v1156_v60, %v341_v3  ;;  %v492_v3 = vrot.slane %v487_v53, %v1087_v6 }
 0x162   : > { %v325_v9 = vrot.slane %v318_v4, %v1126_v36  ;;  %v357_v10 = vmul.f32 0.27406862, %v355_v5  ;;  %v358_v12 = vmul.f32 0.27406862, %v356_v7  ;;  %v496_v4 = vrot.slane %v487_v53, %v1089_v8 }
 0x164   : > { %v332_v13 = vrot.slane %v325_v9, %v1126_v36  ;;  %v361_v14 = vcombine.low %v357_v10, %v358_v12 }
 0x166   : > { %v368_v16 = vrot.slane %v361_v14, %v1126_v36  ;;  %v334_v17 = vadd.f32 %v332_v13, %v281_v15  ;;  %v529_v14 = vld [vmem:[#allocation2 + $0x7] ss:$8 sm:$0x3] }
 0x168   : > { %v375_v22 = vrot.slane %v368_v16, %v1126_v36 }
 0x16a   : > { %v377_v23 = vadd.f32 %v375_v22, %v334_v17 }
 0x16c   : > { %v382_v24 = vrot.slane %v377_v23, %v1087_v6  ;;  %v386_v25 = vrot.slane %v377_v23, %v1089_v8 }
 0x16e   : > { %391 = vrot.lane.b32.xlu1 %v386_v25, %s913_s27  ;;  %389 = vrot.lane.b32.xlu0 %v382_v24, %s913_s27 }
 0x172   : > { %415 = vrot.lane.b32.xlu1 %v386_v25, %s909_s24  ;;  %413 = vrot.lane.b32.xlu0 %v382_v24, %s909_s24 }
 0x176   : > { %427 = vrot.lane.b32.xlu1 %v386_v25, %s914_s28  ;;  %425 = vrot.lane.b32.xlu0 %v382_v24, %s914_s28 }
 0x17a   : > { %457 = vrot.lane.b32.xlu1 %v386_v25, %s911_s15  ;;  %455 = vrot.lane.b32.xlu0 %v382_v24, %s911_s15 }
 0x17e   : > { %469 = vrot.lane.b32.xlu1 %v386_v25, %s912_s26  ;;  %467 = vrot.lane.b32.xlu0 %v382_v24, %s912_s26 }
 0x182   : > { %481 = vrot.lane.b32.xlu1 %v386_v25, %s915_s29  ;;  %479 = vrot.lane.b32.xlu0 %v382_v24, %s915_s29 }
 0x186   : > { %511 = vrot.lane.b32.xlu1 %v386_v25, %s908_s17  ;;  %509 = vrot.lane.b32.xlu0 %v382_v24, %s908_s17  ;;  %s840_s17 = scalar_lea.vmem %s839_s25, 64 }
 0x187   : > { %p842_p11 = scmp.lt.s32.totalorder %s840_s17, %s834_s23 }
 0x189   : > { %p843_p5 = por %p842_p11, %p841_p13 }
 0x18a   : > { %523 = vrot.lane.b32.xlu1 %v386_v25, %s916_s30  ;;  %521 = vrot.lane.b32.xlu0 %v382_v24, %s916_s30 }
 0x18b   : > { %p844_p10 = pnand %p843_p5, %p837_p12 }
 0x1e0   : > { %v392_v26 = vpop.permute.xlu1 %391  ;;  %v390_v27 = vpop.permute.xlu0 %389 }
 0x1e1   : > { %v394_v37 = vsel %vm393_vm4, %v390_v27, %v392_v26  ;;  %v395_v38 = vsel %vm393_vm4, %v392_v26, %v390_v27 }
 0x1e2   : > { %v409_v47 = vmul.f32 %v402_v34, %v395_v38  ;;  %v410_v48 = vmul.f32 %v406_v35, %v394_v37 }
 0x1e4   : > { %v416_v28 = vpop.permute.xlu1 %415  ;;  %v414_v29 = vpop.permute.xlu0 %413  ;;  %v411_v5 = vmul.f32 -1.5, %v409_v47  ;;  %v412_v7 = vmul.f32 -1.5, %v410_v48 }
 0x1e5   : > { %v417_v45 = vsel %vm199_vm1, %v414_v29, %v416_v28  ;;  %v418_v46 = vsel %vm199_vm1, %v416_v28, %v414_v29 }
 0x1e6   : > { %v419_v58 = vmul.f32 %v418_v46, %v1109_v20  ;;  %v420_v61 = vmul.f32 %v417_v45, %v1112_v21 }
 0x1e8   : > { %v428_v31 = vpop.permute.xlu1 %427  ;;  %v426_v32 = vpop.permute.xlu0 %425  ;;  %v422_v15 = vmul.f32 -3.0, %v420_v61 }
 0x1e9   : > { %v430_v43 = vsel %vm429_vm5, %v426_v32, %v428_v31  ;;  %v431_v44 = vsel %vm429_vm5, %v428_v31, %v426_v32 }
 0x1ea   : > { %v445_v54 = vmul.f32 %v438_v39, %v431_v44  ;;  %v446_v55 = vmul.f32 %v442_v40, %v430_v43  ;;  %v424_v34 = vadd.f32 %v422_v15, %v412_v7 }
 0x1ec   : > { %v458_v41 = vpop.permute.xlu1 %457  ;;  %v456_v42 = vpop.permute.xlu0 %455  ;;  %v447_v20 = vmul.f32 1.5, %v445_v54  ;;  %v448_v21 = vmul.f32 1.5, %v446_v55  ;;  %v451_v25 = vmul.f32 -1.5, %v445_v54  ;;  %v452_v26 = vmul.f32 -1.5, %v446_v55 }
 0x1ed   : > { %v459_v49 = vsel %vm297_vm2, %v456_v42, %v458_v41  ;;  %v460_v52 = vsel %vm297_vm2, %v458_v41, %v456_v42 }
 0x1ee   : > { %v461_v1 = vmul.f32 %v460_v52, %v1140_v50  ;;  %v462_v2 = vmul.f32 %v459_v49, %v1143_v51  ;;  %v421_v50 = vmul.f32 -3.0, %v419_v58  ;;  %v449_v27 = vadd.f32 %v447_v20, %v411_v5 }
 0x1ef   : > { %v450_v28 = vadd.f32 %v448_v21, %v412_v7  ;;  %v454_v45 = vadd.f32 %v452_v26, %v424_v34 }
 0x1f0   : > { %v470_v56 = vpop.permute.xlu1 %469  ;;  %v468_v57 = vpop.permute.xlu0 %467  ;;  %v463_v17 = vmul.f32 -3.0, %v461_v1  ;;  %v464_v22 = vmul.f32 -3.0, %v462_v2  ;;  %v423_v33 = vadd.f32 %v421_v50, %v411_v5 }
 0x1f1   : > { %v471_v62 = vsel %vm339_vm3, %v468_v57, %v470_v56  ;;  %v472_v63 = vsel %vm339_vm3, %v470_v56, %v468_v57 }
 0x1f2   : > { %v473_v9 = vmul.f32 %v471_v62, %v1153_v59  ;;  %v474_v10 = vmul.f32 %v472_v63, %v1156_v60  ;;  %v534_v59 = vrot.slane %v529_v14, %v1087_v6  ;;  %v538_v60 = vrot.slane %v529_v14, %v1089_v8 }
 0x1f3   : > { %v465_v38 = vadd.f32 %v463_v17, %v449_v27  ;;  %v466_v39 = vadd.f32 %v464_v22, %v450_v28  ;;  %v453_v44 = vadd.f32 %v451_v25, %v423_v33 }
 0x1f4   : > { %v482_v12 = vpop.permute.xlu1 %481  ;;  %v480_v13 = vpop.permute.xlu0 %479  ;;  %v475_v29 = vmul.f32 3.0, %v473_v9  ;;  %v476_v30 = vmul.f32 3.0, %v474_v10 }
 0x1f5   : > { %v484_v51 = vsel %vm483_vm6, %v480_v13, %v482_v12  ;;  %v485_v16 = vsel %vm483_vm6, %v482_v12, %v480_v13 }
 0x1f6   : > { %v499_v23 = vmul.f32 %v492_v3, %v484_v51  ;;  %v500_v24 = vmul.f32 %v496_v4, %v485_v16  ;;  %v477_v46 = vadd.f32 %v475_v29, %v465_v38  ;;  %v478_v47 = vadd.f32 %v476_v30, %v466_v39 }
 0x1f8   : > { %v512_v31 = vpop.permute.xlu1 %511  ;;  %v510_v32 = vpop.permute.xlu0 %509  ;;  %v505_v40 = vmul.f32 1.5, %v499_v23  ;;  %v506_v6 = vmul.f32 1.5, %v500_v24  ;;  %v501_v41 = vmul.f32 -1.5, %v499_v23  ;;  %v502_v8 = vmul.f32 -1.5, %v500_v24 }
 0x1f9   : > { %v513_v35 = vsel %vm242_vm0, %v510_v32, %v512_v31  ;;  %v514_v37 = vsel %vm242_vm0, %v512_v31, %v510_v32 }
 0x1fa   : > { %v515_v42 = vmul.f32 %v513_v35, %v1103_v18  ;;  %v516_v43 = vmul.f32 %v514_v37, %v1106_v19  ;;  %v507_v56 = vadd.f32 %v505_v40, %v453_v44  ;;  %v508_v57 = vadd.f32 %v506_v6, %v454_v45 }
 0x1fb   : > { %v503_v61 = vadd.f32 %v501_v41, %v477_v46  ;;  %v504_v19 = vadd.f32 %v502_v8, %v478_v47 }
 0x1fc   : > { %v524_v48 = vpop.permute.xlu1 %523  ;;  %v522_v49 = vpop.permute.xlu0 %521  ;;  %v517_v52 = vmul.f32 3.0, %v515_v42  ;;  %v518_v53 = vmul.f32 3.0, %v516_v43 }
 0x1fd   : > { %v526_v54 = vsel %vm525_vm7, %v522_v49, %v524_v48  ;;  %v527_v55 = vsel %vm525_vm7, %v524_v48, %v522_v49 }
 0x1fe   : > { %v541_v58 = vmul.f32 %v534_v59, %v526_v54  ;;  %v542_v18 = vmul.f32 %v538_v60, %v527_v55  ;;  %v519_v62 = vadd.f32 %v517_v52, %v507_v56  ;;  %v520_v63 = vadd.f32 %v518_v53, %v508_v57 }
 0x200   : > { %v543_v1 = vmul.f32 1.5, %v541_v58  ;;  %v544_v2 = vmul.f32 1.5, %v542_v18 }
 0x202   : > { %v545_v3 = vadd.f32 %v543_v1, %v503_v61  ;;  %v546_v4 = vadd.f32 %v544_v2, %v504_v19  ;;  %v547_v5 = vadd.f32 %v543_v1, %v519_v62  ;;  %v548_v7 = vadd.f32 %v544_v2, %v520_v63 }
 0x204   : > { %v549_v20 = vmul.f32 %v545_v3, %v545_v3  ;;  %v550_v21 = vmul.f32 %v546_v4, %v546_v4  ;;  %v551_v9 = vmul.f32 %v547_v5, %v547_v5  ;;  %v552_v11 = vmul.f32 %v548_v7, %v548_v7 }
 0x206   : > { %v553_v10 = vadd.f32 %v551_v9, %v549_v20  ;;  %v554_v12 = vadd.f32 %v552_v11, %v550_v21 }
 0x208   : > { %772 = vrsqrt.f32 %v553_v10  ;;  %vm557_vm8 = vcmp.eq.f32.partialorder %v553_v10, inf  ;;  %v560_v15 = vand.u32 2147483648, %v553_v10  ;;  %vm559_vm9 = vcmp.eq.f32.partialorder %v553_v10, 0.0 }
 0x209   : > { %774 = vrsqrt.f32 %v554_v12  ;;  %vm564_vm10 = vcmp.eq.f32.partialorder %v554_v12, inf  ;;  %v567_v17 = vand.u32 2147483648, %v554_v12  ;;  %vm566_vm11 = vcmp.eq.f32.partialorder %v554_v12, 0.0 }
 0x212   : > { %v773_v13 = vpop.eup %772 }
 0x213   : > { %v775_v14 = vpop.eup %774  ;;  %v556_v50 = vmul.f32 %v773_v13, %v553_v10 }
 0x214   : > { %v563_v51 = vmul.f32 %v775_v14, %v554_v12 }
 0x215   : > { %v558_v16 = vsel %vm557_vm8, %v553_v10, %v556_v50 }
 0x216   : > { %v561_v22 = vsel %vm559_vm9, %v560_v15, %v558_v16  ;;  %v565_v23 = vsel %vm564_vm10, %v554_v12, %v563_v51 }
 0x217   : > { %v568_v24 = vsel %vm566_vm11, %v567_v17, %v565_v23 }
 0x218   : > { %v571_v25 = vcombine.low %v561_v22, %v568_v24 }
 0x21a   : > { %v578_v26 = vrot.slane %v571_v25, %v1126_v36 }
 0x21c   : > { %v585_v59 = vrot.slane %v578_v26, %v1126_v36 }
 0x21e   : > { %591 = vst.msk [vmem:[%s172_s5] sm:$0x3] %vm589_vm12, %v585_v59 }
 0x21f   : > { %847 = shalt.err (!%p844_p10)
}
 0x220   : > { %s848_s19 = scalar_lea.hbm %s1230_s21, 32  ;;  %s852_s26 = scalar_lea.hbm %s1276_s2, 64 }
 0x221   : > { %p849_p1 = scmp.ne.s32.totalorder %s1230_s21, %s848_s19  ;;  %p853_p3 = scmp.lt.u32.totalorder %s1230_s21, %s1276_s2 }
 0x222   : > { %p854_p4 = scmp.lt.u32.totalorder %s852_s26, %s848_s19  ;;  %p856_p0 = scmp.lt.u32.totalorder %s848_s19, %s1230_s21 }
 0x223   : > { %p850_p2 = pnand %p849_p1, %p1025_p8 }
 0x224   : > { %p855_p6 = por %p854_p4, %p853_p3 }
 0x225   : > { %p851_p7 = pneg %p850_p2 }
 0x226   : > { %p857_p9 = por %p856_p0, %p855_p6 }
 0x228   : > { %p858_p12 = pnand %p857_p9, %p851_p7 }
 0x22a   : > { %861 = shalt.err (!%p858_p12)
}
 0x22b   : > { %712 = dma.vmem_to_hbm [thread:$0]  (%p1025_p8), %s1232_s6, 32, %s1230_s21, %s593_s13  }
 0x22c PF: > { %s619_s29 = sand.u32 1, %s892_s9   ;;  %p1295_p13 = scmp.ne.s32.totalorder %s1281_s16, 0 }
 0x22d   : > { %p1296_p11 = scmp.ge.s32.totalorder %s904_s12, 2  ;;  %s620_s30 = scalar_lea.sflag [#allocation4], %s619_s29 }
 0x22f   : > { %p723_p5 = pnand %p1296_p11, %p1295_p13 }
 0x231   : > { %887 = dma.done.wait (!%p723_p5), %s620_s30, 32  }
 0x232   : > { %889 = vsyncadd (!%p723_p5), %s620_s30, 4294967264  ;;  %p16_p10 = scmp.ge.s32.totalorder %s981_s20, 4   ;;  %s1297_s9 = smov %s896_s10 }
 0x233   : > { %s1298_s10 = smov %s900_s11  ;;  %s1299_s11 = smov %s1017_s7 }
 0x234   : > { %s1300_s12 = smov %s981_s20  ;;  %18 = sbr.rel (!%p16_p10) target bundleno = 6 (0x6), region = 85 }
 0x23b   :  { %625 = vsyncpa [#allocation3], 1 }
 0x23c   :  { %627 = vsyncpa [#allocation3 + $0x1], 1 }
 0x23d   :  { %628 = vsyncpa [#allocation6], 1 }
 0x23e   :  { %630 = vsyncpa [#allocation6 + $0x1], 1 }
 0x23f   :  { %631 = vsyncpa [#allocation4], 1 }
 0x240   :  { %633 = vsyncpa [#allocation4 + $0x1], 1 }

</bundles_post_ra>
